<compile_context>
chip_gen: v7x
topology: tpu7x:2x2x1
jax: 0.10.0
libtpu: 0.0.40
codegen_flags: <defaults>
</compile_context>

<pallas_src>
import functools
import math

import jax
import jax.numpy as jnp
import numpy as np
from jax.experimental import pallas as pl
from jax.experimental.pallas import tpu as pltpu  # noqa: F401  (TPU backend)


LANE = 128          # TPU lane width: logits padded to a lane-dense multiple
NEG_INF = -1e9      # same mask fill value as the PyTorch reference


# ----------------------------- shared helpers -------------------------------


def _layer_norm(h, gamma, beta, eps=1e-5):
    mu = jnp.mean(h, axis=-1, keepdims=True)
    var = jnp.mean((h - mu) ** 2, axis=-1, keepdims=True)
    return (h - mu) * jax.lax.rsqrt(var + eps) * gamma + beta


def _gelu_tanh(x):
    c = math.sqrt(2.0 / math.pi)
    return 0.5 * x * (1.0 + jnp.tanh(c * (x + 0.044715 * (x ** 3))))


# ------------------------------ fused kernel --------------------------------


def fused_bert_kernel(
    tok_ref, pos_ref, ids_ref,
    wq_ref, bq_ref, wk_ref, bk_ref, wv_ref, bv_ref, wo_ref, bo_ref,
    g1_ref, be1_ref, g2_ref, be2_ref,
    w1_ref, b1_ref, w2_ref, b2_ref,
    ow_ref, ob_ref,
    out_ref,
    *, B, L, num_heads, n_blocks, compute_dtype,
):
    f32 = jnp.float32
    cdt = compute_dtype

    def mm(a, w):            # a @ w  (MXU, fp32 accumulation)
        return jnp.dot(a.astype(cdt), w.astype(cdt), preferred_element_type=f32)

    def mm_t(a, b):          # a @ b.T (contract last dims, no explicit transpose)
        return jax.lax.dot_general(
            a.astype(cdt), b.astype(cdt),
            (((1,), (1,)), ((), ())), preferred_element_type=f32)

    # --- embedding add + additive key mask, built once in-kernel ---
    x = tok_ref[...] + jnp.concatenate([pos_ref[...]] * B, axis=0)       # (B*L, H)
    # NOTE: additive -1e9 bias matches masked_fill(-1e9) whenever a sequence has
    # at least one non-padding token (always true here); a fully padded row is a
    # degenerate case whose output is meaningless either way.
    kbias = jnp.where(ids_ref[...] > 0, 0.0, NEG_INF).astype(f32)        # (B, L)

    for blk in range(n_blocks):          # static loop over even-indexed blocks
        # ---- multi-head self-attention sublayer (pre-norm + residual) ----
        h = _layer_norm(x, g1_ref[blk], be1_ref[blk])
        acc = None
        for hh in range(num_heads):      # per-head weights => no lane slicing
            q = mm(h, wq_ref[blk, hh]) + bq_ref[blk, hh]   # 1/sqrt(d_k) folded in
            k = mm(h, wk_ref[blk, hh]) + bk_ref[blk, hh]
            v = mm(h, wv_ref[blk, hh]) + bv_ref[blk, hh]
            outs = []
            for b in range(B):           # per-batch (L,L) scores: sublane slices
                qb = q[b * L:(b + 1) * L, :]
                kb = k[b * L:(b + 1) * L, :]
                vb = v[b * L:(b + 1) * L, :]
                s = mm_t(qb, kb) + kbias[b:b + 1, :]
                m = jnp.max(s, axis=-1, keepdims=True)
                e = jnp.exp(s - m)
                p = e * pl.reciprocal(jnp.sum(e, axis=-1, keepdims=True),
                                      approx=True)
                outs.append(mm(p, vb))                     # (L, d_k)
            oh = jnp.concatenate(outs, axis=0)             # (B*L, d_k) sublane concat
            contrib = mm(oh, wo_ref[blk, hh])              # accumulate into Wo
            acc = contrib if acc is None else acc + contrib
        x = x + acc + bo_ref[blk]

        # ---- position-wise feed-forward sublayer (pre-norm + residual) ----
        h2 = _layer_norm(x, g2_ref[blk], be2_ref[blk])
        ff = mm(h2, w1_ref[blk]) + b1_ref[blk]
        ff = _gelu_tanh(ff)
        ff = mm(ff, w2_ref[blk]) + b2_ref[blk]
        x = x + ff

    # ---- output projection, lane-dense (padded vocab) ----
    out_ref[...] = mm(x, ow_ref[...]) + ob_ref[...]


# ------------------------- parameter prep + wrapper --------------------------


def prepare_fused_params(params, *, num_heads, compute_dtype=jnp.float32):
    """One-time repack: per-head split, scale folding, block stacking, padding."""
    H = params["token_emb"].shape[1]
    d_k = H // num_heads
    scale = 1.0 / math.sqrt(d_k)
    # Only even-indexed blocks ever execute in the reference forward
    # (odd entries are skipped when is_mp=False; with is_mp=True they are dead
    #  code — bottle_net.forward returns None).
    used = [p for i, p in enumerate(params["blocks"]) if i % 2 == 0]

    def split_in(w):   # (H, H) -> (heads, H, d_k): per-head projection columns
        return jnp.transpose(w.reshape(H, num_heads, d_k), (1, 0, 2))

    def split_b(b):    # (1, H) -> (heads, 1, d_k)
        return jnp.transpose(b.reshape(1, num_heads, d_k), (1, 0, 2))

    def split_out(w):  # (H, H) -> (heads, d_k, H): per-head rows of Wo
        return w.reshape(num_heads, d_k, H)

    def stk(fn, key):
        return jnp.stack([fn(p[key]) for p in used], axis=0)

    fp = {
        "wq": stk(lambda w: split_in(w) * scale, "wq").astype(compute_dtype),
        "bq": stk(lambda b: split_b(b) * scale, "bq"),
        "wk": stk(split_in, "wk").astype(compute_dtype),
        "bk": stk(split_b, "bk"),
        "wv": stk(split_in, "wv").astype(compute_dtype),
        "bv": stk(split_b, "bv"),
        "wo": stk(split_out, "wo").astype(compute_dtype),
        "bo": stk(lambda b: b, "bo"),
        "g1": stk(lambda g: g, "g1"), "be1": stk(lambda b: b, "be1"),
        "g2": stk(lambda g: g, "g2"), "be2": stk(lambda b: b, "be2"),
        "w1": stk(lambda w: w, "w1").astype(compute_dtype),
        "b1": stk(lambda b: b, "b1"),
        "w2": stk(lambda w: w, "w2").astype(compute_dtype),
        "b2": stk(lambda b: b, "b2"),
    }

    V = params["out_w"].shape[1]
    V_pad = ((V + LANE - 1) // LANE) * LANE          # lane-dense logits
    ow = jnp.zeros((H, V_pad), jnp.float32).at[:, :V].set(params["out_w"])
    ob = jnp.zeros((1, V_pad), jnp.float32).at[:, :V].set(params["out_b"])
    fp["ow"] = ow.astype(compute_dtype)
    fp["ob"] = ob
    fp["token_emb"] = params["token_emb"]
    fp["pos_emb"] = params["pos_emb"]

    meta = dict(num_heads=num_heads, d_k=d_k, n_blocks=len(used),
                V=V, V_pad=V_pad, compute_dtype=compute_dtype)
    return fp, meta


def bert_coldstart_forward(tokens, fparams, meta):
    B, L = tokens.shape
    H = fparams["token_emb"].shape[1]
    # Data-dependent token-embedding gather stays in plain JAX.
    tok = fparams["token_emb"][tokens].reshape(B * L, H)

    kernel = functools.partial(
        fused_bert_kernel, B=B, L=L,
        num_heads=meta["num_heads"], n_blocks=meta["n_blocks"],
        compute_dtype=meta["compute_dtype"])

    # TODO(synk): at production batch sizes add a "parallel" grid axis over row
    # tiles so v7x's two TensorCores split the work (and tile out_w along V for
    # realistic vocabs); at B*L=16 a single fused program minimizes overhead.
    logits_pad = pl.pallas_call(
        kernel,
        out_shape=jax.ShapeDtypeStruct((B * L, meta["V_pad"]), jnp.float32),
    )(
        tok, fparams["pos_emb"], tokens,
        fparams["wq"], fparams["bq"], fparams["wk"], fparams["bk"],
        fparams["wv"], fparams["bv"], fparams["wo"], fparams["bo"],
        fparams["g1"], fparams["be1"], fparams["g2"], fparams["be2"],
        fparams["w1"], fparams["b1"], fparams["w2"], fparams["b2"],
        fparams["ow"], fparams["ob"],
    )
    return logits_pad.reshape(B, L, meta["V_pad"])[:, :, :meta["V"]]


# --------------------------- pure-JAX reference ------------------------------


def _reference_forward(tokens, params, *, num_heads):
    B, L = tokens.shape
    H = params["token_emb"].shape[1]
    d_k = H // num_heads
    h = params["token_emb"][tokens] + params["pos_emb"][None, :, :]
    key_mask = (tokens > 0).astype(jnp.float32)
    mask = jnp.broadcast_to(key_mask[:, None, :], (B, L, L))

    for i, p in enumerate(params["blocks"]):
        if i % 2 != 0:
            continue
        x = h
        n = _layer_norm(x, p["g1"][0], p["be1"][0])
        q = n @ p["wq"] + p["bq"][0]
        k = n @ p["wk"] + p["bk"][0]
        v = n @ p["wv"] + p["bv"][0]
        qh = q.reshape(B, L, num_heads, d_k).transpose(0, 2, 1, 3)
        kh = k.reshape(B, L, num_heads, d_k).transpose(0, 2, 1, 3)
        vh = v.reshape(B, L, num_heads, d_k).transpose(0, 2, 1, 3)
        s = jnp.einsum("bhqd,bhkd->bhqk", qh, kh) / math.sqrt(d_k)
        s = jnp.where(mask[:, None, :, :] == 0.0, NEG_INF, s)
        a = jax.nn.softmax(s, axis=-1)
        o = jnp.einsum("bhqk,bhkd->bhqd", a, vh).transpose(0, 2, 1, 3).reshape(B, L, H)
        x = x + (o @ p["wo"] + p["bo"][0])
        n2 = _layer_norm(x, p["g2"][0], p["be2"][0])
        ff = _gelu_tanh(n2 @ p["w1"] + p["b1"][0]) @ p["w2"] + p["b2"][0]
        h = x + ff

    return h @ params["out_w"] + params["out_b"][0]


# ------------------------------ init & main ----------------------------------


def init_params(key, *, vocab, max_len, hidden, ffn, block_num, num_items):
    keys = iter(jax.random.split(key, 64))

    def lin(kin, kout, scale):
        return (
            jax.random.normal(next(keys), (kin, kout), jnp.float32) * scale,
            jax.random.normal(next(keys), (1, kout), jnp.float32) * scale,
        )

    tok = jax.random.normal(next(keys), (vocab, hidden), jnp.float32) * 0.02
    tok = tok.at[0].set(0.0)  # padding_idx=0
    pos = jax.random.normal(next(keys), (max_len, hidden), jnp.float32) * 0.02

    blocks = []
    for _ in range(block_num):
        wq, bq = lin(hidden, hidden, 0.05)
        wk, bk = lin(hidden, hidden, 0.05)
        wv, bv = lin(hidden, hidden, 0.05)
        wo, bo = lin(hidden, hidden, 0.05)
        w1, b1 = lin(hidden, ffn, 0.05)
        w2, b2 = lin(ffn, hidden, 0.05)
        g1 = 1.0 + 0.1 * jax.random.normal(next(keys), (1, hidden), jnp.float32)
        be1 = 0.1 * jax.random.normal(next(keys), (1, hidden), jnp.float32)
        g2 = 1.0 + 0.1 * jax.random.normal(next(keys), (1, hidden), jnp.float32)
        be2 = 0.1 * jax.random.normal(next(keys), (1, hidden), jnp.float32)
        blocks.append(dict(wq=wq, bq=bq, wk=wk, bk=bk, wv=wv, bv=bv, wo=wo, bo=bo,
                           g1=g1, be1=be1, g2=g2, be2=be2,
                           w1=w1, b1=b1, w2=w2, b2=b2))

    out_w, out_b = lin(hidden, num_items + 1, 0.05)
    return dict(token_emb=tok, pos_emb=pos, blocks=blocks, out_w=out_w, out_b=out_b)


if __name__ == "__main__":
    # Model hyper-params (small, consistent with the module's constructor):
    num_items = 50
    max_len = 8
    block_num = 2          # reference BERT uses heads = block_num internally
    num_heads = block_num
    num_embedding = 100
    hidden_size = 32
    B, L, H = 2, max_len, hidden_size
    vocab = num_embedding + 1

    key = jax.random.PRNGKey(0)
    kp, kx = jax.random.split(key)
    params = init_params(kp, vocab=vocab, max_len=max_len, hidden=H,
                         ffn=4 * H, block_num=block_num, num_items=num_items)

    # token ids in [0, vocab); zeros act as padding
    tokens = jax.random.randint(kx, (B, L), 0, vocab, dtype=jnp.int32)
    tokens = tokens.at[0, :2].set(0)   # force some padding positions

    ref = _reference_forward(tokens, params, num_heads=num_heads)

    # --- fp32 path (exact numerics; v5e-friendly: all elementwise math fp32) ---
    fp32_params, fp32_meta = prepare_fused_params(
        params, num_heads=num_heads, compute_dtype=jnp.float32)
    logits = bert_coldstart_forward(tokens, fp32_params, fp32_meta)
    logits = jax.block_until_ready(logits)
    assert logits.shape == (B, L, num_items + 1)
    np.testing.assert_allclose(np.asarray(logits), np.asarray(ref),
                               rtol=2e-2, atol=2e-3)

    # --- bf16 matmul-operand path (v6e / v7x): weights stored bf16, activations
    #     cast only at the matmul boundary; LayerNorm / GELU / softmax stay fp32.
    bf16_params, bf16_meta = prepare_fused_params(
        params, num_heads=num_heads, compute_dtype=jnp.bfloat16)
    logits_bf16 = bert_coldstart_forward(tokens, bf16_params, bf16_meta)
    logits_bf16 = jax.block_until_ready(logits_bf16)
    np.testing.assert_allclose(np.asarray(logits_bf16), np.asarray(ref),
                               rtol=2e-1, atol=2e-2)

    print("KERNEL_OK")
</pallas_src>

<mosaic_0001>
module attributes {stable_mosaic.version = 11 : i64} {
  func.func @fused_bert_kernel(%arg0: memref<16x32xf32, #tpu.memory_space<vmem>>, %arg1: memref<8x32xf32, #tpu.memory_space<vmem>>, %arg2: memref<2x8xi32, #tpu.memory_space<vmem>>, %arg3: memref<1x2x32x16xf32, #tpu.memory_space<vmem>>, %arg4: memref<1x2x1x16xf32, #tpu.memory_space<vmem>>, %arg5: memref<1x2x32x16xf32, #tpu.memory_space<vmem>>, %arg6: memref<1x2x1x16xf32, #tpu.memory_space<vmem>>, %arg7: memref<1x2x32x16xf32, #tpu.memory_space<vmem>>, %arg8: memref<1x2x1x16xf32, #tpu.memory_space<vmem>>, %arg9: memref<1x2x16x32xf32, #tpu.memory_space<vmem>>, %arg10: memref<1x1x32xf32, #tpu.memory_space<vmem>>, %arg11: memref<1x1x32xf32, #tpu.memory_space<vmem>>, %arg12: memref<1x1x32xf32, #tpu.memory_space<vmem>>, %arg13: memref<1x1x32xf32, #tpu.memory_space<vmem>>, %arg14: memref<1x1x32xf32, #tpu.memory_space<vmem>>, %arg15: memref<1x32x128xf32, #tpu.memory_space<vmem>>, %arg16: memref<1x1x128xf32, #tpu.memory_space<vmem>>, %arg17: memref<1x128x32xf32, #tpu.memory_space<vmem>>, %arg18: memref<1x1x32xf32, #tpu.memory_space<vmem>>, %arg19: memref<32x128xf32, #tpu.memory_space<vmem>>, %arg20: memref<1x128xf32, #tpu.memory_space<vmem>>, %arg21: memref<16x128xf32, #tpu.memory_space<vmem>>) attributes {dimension_semantics = [], scalar_prefetch = 0 : i64, scratch_operands = 0 : i64, tpu.core_type = #tpu.core_type<tc>} {
    %c0 = arith.constant 0 : index
    %c0_0 = arith.constant 0 : index
    %0 = vector.load %arg0[%c0, %c0_0] : memref<16x32xf32, #tpu.memory_space<vmem>>, vector<16x32xf32>
    %c0_1 = arith.constant 0 : index
    %c0_2 = arith.constant 0 : index
    %1 = vector.load %arg1[%c0_1, %c0_2] : memref<8x32xf32, #tpu.memory_space<vmem>>, vector<8x32xf32>
    %2 = tpu.concatenate %1, %1 in 0 : vector<8x32xf32>, vector<8x32xf32> -> vector<16x32xf32>
    %3 = arith.addf %0, %2 : vector<16x32xf32>
    %c0_3 = arith.constant 0 : index
    %c0_4 = arith.constant 0 : index
    %4 = vector.load %arg2[%c0_3, %c0_4] : memref<2x8xi32, #tpu.memory_space<vmem>>, vector<2x8xi32>
    %c0_i32 = arith.constant 0 : i32
    %5 = vector.broadcast %c0_i32 : i32 to vector<2x8xi32>
    %6 = arith.cmpi sgt, %4, %5 : vector<2x8xi32>
    %cst = arith.constant 0.000000e+00 : f32
    %cst_5 = arith.constant -1.000000e+09 : f32
    %7 = vector.broadcast %cst : f32 to vector<2x8xf32>
    %8 = vector.broadcast %cst_5 : f32 to vector<2x8xf32>
    %9 = arith.select %6, %7, %8 : vector<2x8xi1>, vector<2x8xf32>
    %c0_6 = arith.constant 0 : index
    %c0_7 = arith.constant 0 : index
    %c0_8 = arith.constant 0 : index
    %10 = vector.load %arg11[%c0_6, %c0_7, %c0_8] : memref<1x1x32xf32, #tpu.memory_space<vmem>>, vector<1x1x32xf32>
    %11 = vector.shape_cast %10 : vector<1x1x32xf32> to vector<1x32xf32>
    %c0_9 = arith.constant 0 : index
    %c0_10 = arith.constant 0 : index
    %c0_11 = arith.constant 0 : index
    %12 = vector.load %arg12[%c0_9, %c0_10, %c0_11] : memref<1x1x32xf32, #tpu.memory_space<vmem>>, vector<1x1x32xf32>
    %13 = vector.shape_cast %12 : vector<1x1x32xf32> to vector<1x32xf32>
    %cst_12 = arith.constant dense<0.000000e+00> : vector<16xf32>
    %14 = vector.multi_reduction <add>, %3, %cst_12 [1] : vector<16x32xf32> to vector<16xf32>
    %15 = vector.shape_cast %14 : vector<16xf32> to vector<16x1xf32>
    %cst_13 = arith.constant 3.200000e+01 : f32
    %16 = vector.broadcast %cst_13 : f32 to vector<16x1xf32>
    %17 = arith.divf %15, %16 : vector<16x1xf32>
    %18 = vector.broadcast %17 : vector<16x1xf32> to vector<16x32xf32>
    %19 = arith.subf %3, %18 : vector<16x32xf32>
    %20 = arith.mulf %19, %19 : vector<16x32xf32>
    %cst_14 = arith.constant dense<0.000000e+00> : vector<16xf32>
    %21 = vector.multi_reduction <add>, %20, %cst_14 [1] : vector<16x32xf32> to vector<16xf32>
    %22 = vector.shape_cast %21 : vector<16xf32> to vector<16x1xf32>
    %cst_15 = arith.constant 3.200000e+01 : f32
    %23 = vector.broadcast %cst_15 : f32 to vector<16x1xf32>
    %24 = arith.divf %22, %23 : vector<16x1xf32>
    %25 = vector.broadcast %17 : vector<16x1xf32> to vector<16x32xf32>
    %26 = arith.subf %3, %25 : vector<16x32xf32>
    %cst_16 = arith.constant 9.99999974E-6 : f32
    %27 = vector.broadcast %cst_16 : f32 to vector<16x1xf32>
    %28 = arith.addf %24, %27 : vector<16x1xf32>
    %29 = math.rsqrt %28 : vector<16x1xf32>
    %30 = vector.broadcast %29 : vector<16x1xf32> to vector<16x32xf32>
    %31 = arith.mulf %26, %30 : vector<16x32xf32>
    %32 = vector.broadcast %11 : vector<1x32xf32> to vector<16x32xf32>
    %33 = arith.mulf %31, %32 : vector<16x32xf32>
    %34 = vector.broadcast %13 : vector<1x32xf32> to vector<16x32xf32>
    %35 = arith.addf %33, %34 : vector<16x32xf32>
    %c0_17 = arith.constant 0 : index
    %c0_18 = arith.constant 0 : index
    %c0_19 = arith.constant 0 : index
    %c0_20 = arith.constant 0 : index
    %36 = vector.load %arg3[%c0_17, %c0_18, %c0_19, %c0_20] : memref<1x2x32x16xf32, #tpu.memory_space<vmem>>, vector<1x1x32x16xf32>
    %37 = vector.shape_cast %36 : vector<1x1x32x16xf32> to vector<32x16xf32>
    %cst_21 = arith.constant dense<0.000000e+00> : vector<16x16xf32>
    %38 = tpu.matmul %35, %37, %cst_21 {dimension_numbers = #tpu.dot_dimension_numbers<[1], [0], [0], [1], [0, 0, 1, 1], [], []>} : vector<16x32xf32>, vector<32x16xf32>, vector<16x16xf32> -> vector<16x16xf32>
    %c0_22 = arith.constant 0 : index
    %c0_23 = arith.constant 0 : index
    %c0_24 = arith.constant 0 : index
    %c0_25 = arith.constant 0 : index
    %39 = vector.load %arg4[%c0_22, %c0_23, %c0_24, %c0_25] : memref<1x2x1x16xf32, #tpu.memory_space<vmem>>, vector<1x1x1x16xf32>
    %40 = vector.shape_cast %39 : vector<1x1x1x16xf32> to vector<1x16xf32>
    %41 = vector.broadcast %40 : vector<1x16xf32> to vector<16x16xf32>
    %42 = arith.addf %38, %41 : vector<16x16xf32>
    %c0_26 = arith.constant 0 : index
    %c0_27 = arith.constant 0 : index
    %c0_28 = arith.constant 0 : index
    %c0_29 = arith.constant 0 : index
    %43 = vector.load %arg5[%c0_26, %c0_27, %c0_28, %c0_29] : memref<1x2x32x16xf32, #tpu.memory_space<vmem>>, vector<1x1x32x16xf32>
    %44 = vector.shape_cast %43 : vector<1x1x32x16xf32> to vector<32x16xf32>
    %cst_30 = arith.constant dense<0.000000e+00> : vector<16x16xf32>
    %45 = tpu.matmul %35, %44, %cst_30 {dimension_numbers = #tpu.dot_dimension_numbers<[1], [0], [0], [1], [0, 0, 1, 1], [], []>} : vector<16x32xf32>, vector<32x16xf32>, vector<16x16xf32> -> vector<16x16xf32>
    %c0_31 = arith.constant 0 : index
    %c0_32 = arith.constant 0 : index
    %c0_33 = arith.constant 0 : index
    %c0_34 = arith.constant 0 : index
    %46 = vector.load %arg6[%c0_31, %c0_32, %c0_33, %c0_34] : memref<1x2x1x16xf32, #tpu.memory_space<vmem>>, vector<1x1x1x16xf32>
    %47 = vector.shape_cast %46 : vector<1x1x1x16xf32> to vector<1x16xf32>
    %48 = vector.broadcast %47 : vector<1x16xf32> to vector<16x16xf32>
    %49 = arith.addf %45, %48 : vector<16x16xf32>
    %c0_35 = arith.constant 0 : index
    %c0_36 = arith.constant 0 : index
    %c0_37 = arith.constant 0 : index
    %c0_38 = arith.constant 0 : index
    %50 = vector.load %arg7[%c0_35, %c0_36, %c0_37, %c0_38] : memref<1x2x32x16xf32, #tpu.memory_space<vmem>>, vector<1x1x32x16xf32>
    %51 = vector.shape_cast %50 : vector<1x1x32x16xf32> to vector<32x16xf32>
    %cst_39 = arith.constant dense<0.000000e+00> : vector<16x16xf32>
    %52 = tpu.matmul %35, %51, %cst_39 {dimension_numbers = #tpu.dot_dimension_numbers<[1], [0], [0], [1], [0, 0, 1, 1], [], []>} : vector<16x32xf32>, vector<32x16xf32>, vector<16x16xf32> -> vector<16x16xf32>
    %c0_40 = arith.constant 0 : index
    %c0_41 = arith.constant 0 : index
    %c0_42 = arith.constant 0 : index
    %c0_43 = arith.constant 0 : index
    %53 = vector.load %arg8[%c0_40, %c0_41, %c0_42, %c0_43] : memref<1x2x1x16xf32, #tpu.memory_space<vmem>>, vector<1x1x1x16xf32>
    %54 = vector.shape_cast %53 : vector<1x1x1x16xf32> to vector<1x16xf32>
    %55 = vector.broadcast %54 : vector<1x16xf32> to vector<16x16xf32>
    %56 = arith.addf %52, %55 : vector<16x16xf32>
    %57 = vector.extract_strided_slice %42 {offsets = [0, 0], sizes = [8, 16], strides = [1, 1]} : vector<16x16xf32> to vector<8x16xf32>
    %58 = vector.extract_strided_slice %49 {offsets = [0, 0], sizes = [8, 16], strides = [1, 1]} : vector<16x16xf32> to vector<8x16xf32>
    %59 = vector.extract_strided_slice %56 {offsets = [0, 0], sizes = [8, 16], strides = [1, 1]} : vector<16x16xf32> to vector<8x16xf32>
    %cst_44 = arith.constant dense<0.000000e+00> : vector<8x8xf32>
    %60 = tpu.matmul %57, %58, %cst_44 {dimension_numbers = #tpu.dot_dimension_numbers<[1], [1], [0], [0], [0, 0, 1, 0], [], []>} : vector<8x16xf32>, vector<8x16xf32>, vector<8x8xf32> -> vector<8x8xf32>
    %61 = vector.extract_strided_slice %9 {offsets = [0, 0], sizes = [1, 8], strides = [1, 1]} : vector<2x8xf32> to vector<1x8xf32>
    %62 = vector.broadcast %61 : vector<1x8xf32> to vector<8x8xf32>
    %63 = arith.addf %60, %62 : vector<8x8xf32>
    %cst_45 = arith.constant dense<0xFF800000> : vector<8xf32>
    %64 = vector.multi_reduction <maximumf>, %63, %cst_45 [1] : vector<8x8xf32> to vector<8xf32>
    %65 = vector.shape_cast %64 : vector<8xf32> to vector<8x1xf32>
    %66 = vector.broadcast %65 : vector<8x1xf32> to vector<8x8xf32>
    %67 = arith.subf %63, %66 : vector<8x8xf32>
    %68 = math.exp %67 : vector<8x8xf32>
    %cst_46 = arith.constant dense<0.000000e+00> : vector<8xf32>
    %69 = vector.multi_reduction <add>, %68, %cst_46 [1] : vector<8x8xf32> to vector<8xf32>
    %70 = vector.shape_cast %69 : vector<8xf32> to vector<8x1xf32>
    %71 = tpu.reciprocal %70 {approx = true} : vector<8x1xf32> -> vector<8x1xf32>
    %72 = vector.broadcast %71 : vector<8x1xf32> to vector<8x8xf32>
    %73 = arith.mulf %68, %72 : vector<8x8xf32>
    %cst_47 = arith.constant dense<0.000000e+00> : vector<8x16xf32>
    %74 = tpu.matmul %73, %59, %cst_47 {dimension_numbers = #tpu.dot_dimension_numbers<[1], [0], [0], [1], [0, 0, 1, 1], [], []>} : vector<8x8xf32>, vector<8x16xf32>, vector<8x16xf32> -> vector<8x16xf32>
    %75 = vector.extract_strided_slice %42 {offsets = [8, 0], sizes = [8, 16], strides = [1, 1]} : vector<16x16xf32> to vector<8x16xf32>
    %76 = vector.extract_strided_slice %49 {offsets = [8, 0], sizes = [8, 16], strides = [1, 1]} : vector<16x16xf32> to vector<8x16xf32>
    %77 = vector.extract_strided_slice %56 {offsets = [8, 0], sizes = [8, 16], strides = [1, 1]} : vector<16x16xf32> to vector<8x16xf32>
    %cst_48 = arith.constant dense<0.000000e+00> : vector<8x8xf32>
    %78 = tpu.matmul %75, %76, %cst_48 {dimension_numbers = #tpu.dot_dimension_numbers<[1], [1], [0], [0], [0, 0, 1, 0], [], []>} : vector<8x16xf32>, vector<8x16xf32>, vector<8x8xf32> -> vector<8x8xf32>
    %79 = vector.extract_strided_slice %9 {offsets = [1, 0], sizes = [1, 8], strides = [1, 1]} : vector<2x8xf32> to vector<1x8xf32>
    %80 = vector.broadcast %79 : vector<1x8xf32> to vector<8x8xf32>
    %81 = arith.addf %78, %80 : vector<8x8xf32>
    %cst_49 = arith.constant dense<0xFF800000> : vector<8xf32>
    %82 = vector.multi_reduction <maximumf>, %81, %cst_49 [1] : vector<8x8xf32> to vector<8xf32>
    %83 = vector.shape_cast %82 : vector<8xf32> to vector<8x1xf32>
    %84 = vector.broadcast %83 : vector<8x1xf32> to vector<8x8xf32>
    %85 = arith.subf %81, %84 : vector<8x8xf32>
    %86 = math.exp %85 : vector<8x8xf32>
    %cst_50 = arith.constant dense<0.000000e+00> : vector<8xf32>
    %87 = vector.multi_reduction <add>, %86, %cst_50 [1] : vector<8x8xf32> to vector<8xf32>
    %88 = vector.shape_cast %87 : vector<8xf32> to vector<8x1xf32>
    %89 = tpu.reciprocal %88 {approx = true} : vector<8x1xf32> -> vector<8x1xf32>
    %90 = vector.broadcast %89 : vector<8x1xf32> to vector<8x8xf32>
    %91 = arith.mulf %86, %90 : vector<8x8xf32>
    %cst_51 = arith.constant dense<0.000000e+00> : vector<8x16xf32>
    %92 = tpu.matmul %91, %77, %cst_51 {dimension_numbers = #tpu.dot_dimension_numbers<[1], [0], [0], [1], [0, 0, 1, 1], [], []>} : vector<8x8xf32>, vector<8x16xf32>, vector<8x16xf32> -> vector<8x16xf32>
    %93 = tpu.concatenate %74, %92 in 0 : vector<8x16xf32>, vector<8x16xf32> -> vector<16x16xf32>
    %c0_52 = arith.constant 0 : index
    %c0_53 = arith.constant 0 : index
    %c0_54 = arith.constant 0 : index
    %c0_55 = arith.constant 0 : index
    %94 = vector.load %arg9[%c0_52, %c0_53, %c0_54, %c0_55] : memref<1x2x16x32xf32, #tpu.memory_space<vmem>>, vector<1x1x16x32xf32>
    %95 = vector.shape_cast %94 : vector<1x1x16x32xf32> to vector<16x32xf32>
    %cst_56 = arith.constant dense<0.000000e+00> : vector<16x32xf32>
    %96 = tpu.matmul %93, %95, %cst_56 {dimension_numbers = #tpu.dot_dimension_numbers<[1], [0], [0], [1], [0, 0, 1, 1], [], []>} : vector<16x16xf32>, vector<16x32xf32>, vector<16x32xf32> -> vector<16x32xf32>
    %c0_57 = arith.constant 0 : index
    %c1 = arith.constant 1 : index
    %c0_58 = arith.constant 0 : index
    %c0_59 = arith.constant 0 : index
    %97 = vector.load %arg3[%c0_57, %c1, %c0_58, %c0_59] : memref<1x2x32x16xf32, #tpu.memory_space<vmem>>, vector<1x1x32x16xf32>
    %98 = vector.shape_cast %97 : vector<1x1x32x16xf32> to vector<32x16xf32>
    %cst_60 = arith.constant dense<0.000000e+00> : vector<16x16xf32>
    %99 = tpu.matmul %35, %98, %cst_60 {dimension_numbers = #tpu.dot_dimension_numbers<[1], [0], [0], [1], [0, 0, 1, 1], [], []>} : vector<16x32xf32>, vector<32x16xf32>, vector<16x16xf32> -> vector<16x16xf32>
    %c0_61 = arith.constant 0 : index
    %c1_62 = arith.constant 1 : index
    %c0_63 = arith.constant 0 : index
    %c0_64 = arith.constant 0 : index
    %100 = vector.load %arg4[%c0_61, %c1_62, %c0_63, %c0_64] : memref<1x2x1x16xf32, #tpu.memory_space<vmem>>, vector<1x1x1x16xf32>
    %101 = vector.shape_cast %100 : vector<1x1x1x16xf32> to vector<1x16xf32>
    %102 = vector.broadcast %101 : vector<1x16xf32> to vector<16x16xf32>
    %103 = arith.addf %99, %102 : vector<16x16xf32>
    %c0_65 = arith.constant 0 : index
    %c1_66 = arith.constant 1 : index
    %c0_67 = arith.constant 0 : index
    %c0_68 = arith.constant 0 : index
    %104 = vector.load %arg5[%c0_65, %c1_66, %c0_67, %c0_68] : memref<1x2x32x16xf32, #tpu.memory_space<vmem>>, vector<1x1x32x16xf32>
    %105 = vector.shape_cast %104 : vector<1x1x32x16xf32> to vector<32x16xf32>
    %cst_69 = arith.constant dense<0.000000e+00> : vector<16x16xf32>
    %106 = tpu.matmul %35, %105, %cst_69 {dimension_numbers = #tpu.dot_dimension_numbers<[1], [0], [0], [1], [0, 0, 1, 1], [], []>} : vector<16x32xf32>, vector<32x16xf32>, vector<16x16xf32> -> vector<16x16xf32>
    %c0_70 = arith.constant 0 : index
    %c1_71 = arith.constant 1 : index
    %c0_72 = arith.constant 0 : index
    %c0_73 = arith.constant 0 : index
    %107 = vector.load %arg6[%c0_70, %c1_71, %c0_72, %c0_73] : memref<1x2x1x16xf32, #tpu.memory_space<vmem>>, vector<1x1x1x16xf32>
    %108 = vector.shape_cast %107 : vector<1x1x1x16xf32> to vector<1x16xf32>
    %109 = vector.broadcast %108 : vector<1x16xf32> to vector<16x16xf32>
    %110 = arith.addf %106, %109 : vector<16x16xf32>
    %c0_74 = arith.constant 0 : index
    %c1_75 = arith.constant 1 : index
    %c0_76 = arith.constant 0 : index
    %c0_77 = arith.constant 0 : index
    %111 = vector.load %arg7[%c0_74, %c1_75, %c0_76, %c0_77] : memref<1x2x32x16xf32, #tpu.memory_space<vmem>>, vector<1x1x32x16xf32>
    %112 = vector.shape_cast %111 : vector<1x1x32x16xf32> to vector<32x16xf32>
    %cst_78 = arith.constant dense<0.000000e+00> : vector<16x16xf32>
    %113 = tpu.matmul %35, %112, %cst_78 {dimension_numbers = #tpu.dot_dimension_numbers<[1], [0], [0], [1], [0, 0, 1, 1], [], []>} : vector<16x32xf32>, vector<32x16xf32>, vector<16x16xf32> -> vector<16x16xf32>
    %c0_79 = arith.constant 0 : index
    %c1_80 = arith.constant 1 : index
    %c0_81 = arith.constant 0 : index
    %c0_82 = arith.constant 0 : index
    %114 = vector.load %arg8[%c0_79, %c1_80, %c0_81, %c0_82] : memref<1x2x1x16xf32, #tpu.memory_space<vmem>>, vector<1x1x1x16xf32>
    %115 = vector.shape_cast %114 : vector<1x1x1x16xf32> to vector<1x16xf32>
    %116 = vector.broadcast %115 : vector<1x16xf32> to vector<16x16xf32>
    %117 = arith.addf %113, %116 : vector<16x16xf32>
    %118 = vector.extract_strided_slice %103 {offsets = [0, 0], sizes = [8, 16], strides = [1, 1]} : vector<16x16xf32> to vector<8x16xf32>
    %119 = vector.extract_strided_slice %110 {offsets = [0, 0], sizes = [8, 16], strides = [1, 1]} : vector<16x16xf32> to vector<8x16xf32>
    %120 = vector.extract_strided_slice %117 {offsets = [0, 0], sizes = [8, 16], strides = [1, 1]} : vector<16x16xf32> to vector<8x16xf32>
    %cst_83 = arith.constant dense<0.000000e+00> : vector<8x8xf32>
    %121 = tpu.matmul %118, %119, %cst_83 {dimension_numbers = #tpu.dot_dimension_numbers<[1], [1], [0], [0], [0, 0, 1, 0], [], []>} : vector<8x16xf32>, vector<8x16xf32>, vector<8x8xf32> -> vector<8x8xf32>
    %122 = vector.extract_strided_slice %9 {offsets = [0, 0], sizes = [1, 8], strides = [1, 1]} : vector<2x8xf32> to vector<1x8xf32>
    %123 = vector.broadcast %122 : vector<1x8xf32> to vector<8x8xf32>
    %124 = arith.addf %121, %123 : vector<8x8xf32>
    %cst_84 = arith.constant dense<0xFF800000> : vector<8xf32>
    %125 = vector.multi_reduction <maximumf>, %124, %cst_84 [1] : vector<8x8xf32> to vector<8xf32>
    %126 = vector.shape_cast %125 : vector<8xf32> to vector<8x1xf32>
    %127 = vector.broadcast %126 : vector<8x1xf32> to vector<8x8xf32>
    %128 = arith.subf %124, %127 : vector<8x8xf32>
    %129 = math.exp %128 : vector<8x8xf32>
    %cst_85 = arith.constant dense<0.000000e+00> : vector<8xf32>
    %130 = vector.multi_reduction <add>, %129, %cst_85 [1] : vector<8x8xf32> to vector<8xf32>
    %131 = vector.shape_cast %130 : vector<8xf32> to vector<8x1xf32>
    %132 = tpu.reciprocal %131 {approx = true} : vector<8x1xf32> -> vector<8x1xf32>
    %133 = vector.broadcast %132 : vector<8x1xf32> to vector<8x8xf32>
    %134 = arith.mulf %129, %133 : vector<8x8xf32>
    %cst_86 = arith.constant dense<0.000000e+00> : vector<8x16xf32>
    %135 = tpu.matmul %134, %120, %cst_86 {dimension_numbers = #tpu.dot_dimension_numbers<[1], [0], [0], [1], [0, 0, 1, 1], [], []>} : vector<8x8xf32>, vector<8x16xf32>, vector<8x16xf32> -> vector<8x16xf32>
    %136 = vector.extract_strided_slice %103 {offsets = [8, 0], sizes = [8, 16], strides = [1, 1]} : vector<16x16xf32> to vector<8x16xf32>
    %137 = vector.extract_strided_slice %110 {offsets = [8, 0], sizes = [8, 16], strides = [1, 1]} : vector<16x16xf32> to vector<8x16xf32>
    %138 = vector.extract_strided_slice %117 {offsets = [8, 0], sizes = [8, 16], strides = [1, 1]} : vector<16x16xf32> to vector<8x16xf32>
    %cst_87 = arith.constant dense<0.000000e+00> : vector<8x8xf32>
    %139 = tpu.matmul %136, %137, %cst_87 {dimension_numbers = #tpu.dot_dimension_numbers<[1], [1], [0], [0], [0, 0, 1, 0], [], []>} : vector<8x16xf32>, vector<8x16xf32>, vector<8x8xf32> -> vector<8x8xf32>
    %140 = vector.extract_strided_slice %9 {offsets = [1, 0], sizes = [1, 8], strides = [1, 1]} : vector<2x8xf32> to vector<1x8xf32>
    %141 = vector.broadcast %140 : vector<1x8xf32> to vector<8x8xf32>
    %142 = arith.addf %139, %141 : vector<8x8xf32>
    %cst_88 = arith.constant dense<0xFF800000> : vector<8xf32>
    %143 = vector.multi_reduction <maximumf>, %142, %cst_88 [1] : vector<8x8xf32> to vector<8xf32>
    %144 = vector.shape_cast %143 : vector<8xf32> to vector<8x1xf32>
    %145 = vector.broadcast %144 : vector<8x1xf32> to vector<8x8xf32>
    %146 = arith.subf %142, %145 : vector<8x8xf32>
    %147 = math.exp %146 : vector<8x8xf32>
    %cst_89 = arith.constant dense<0.000000e+00> : vector<8xf32>
    %148 = vector.multi_reduction <add>, %147, %cst_89 [1] : vector<8x8xf32> to vector<8xf32>
    %149 = vector.shape_cast %148 : vector<8xf32> to vector<8x1xf32>
    %150 = tpu.reciprocal %149 {approx = true} : vector<8x1xf32> -> vector<8x1xf32>
    %151 = vector.broadcast %150 : vector<8x1xf32> to vector<8x8xf32>
    %152 = arith.mulf %147, %151 : vector<8x8xf32>
    %cst_90 = arith.constant dense<0.000000e+00> : vector<8x16xf32>
    %153 = tpu.matmul %152, %138, %cst_90 {dimension_numbers = #tpu.dot_dimension_numbers<[1], [0], [0], [1], [0, 0, 1, 1], [], []>} : vector<8x8xf32>, vector<8x16xf32>, vector<8x16xf32> -> vector<8x16xf32>
    %154 = tpu.concatenate %135, %153 in 0 : vector<8x16xf32>, vector<8x16xf32> -> vector<16x16xf32>
    %c0_91 = arith.constant 0 : index
    %c1_92 = arith.constant 1 : index
    %c0_93 = arith.constant 0 : index
    %c0_94 = arith.constant 0 : index
    %155 = vector.load %arg9[%c0_91, %c1_92, %c0_93, %c0_94] : memref<1x2x16x32xf32, #tpu.memory_space<vmem>>, vector<1x1x16x32xf32>
    %156 = vector.shape_cast %155 : vector<1x1x16x32xf32> to vector<16x32xf32>
    %cst_95 = arith.constant dense<0.000000e+00> : vector<16x32xf32>
    %157 = tpu.matmul %154, %156, %cst_95 {dimension_numbers = #tpu.dot_dimension_numbers<[1], [0], [0], [1], [0, 0, 1, 1], [], []>} : vector<16x16xf32>, vector<16x32xf32>, vector<16x32xf32> -> vector<16x32xf32>
    %158 = arith.addf %96, %157 : vector<16x32xf32>
    %159 = arith.addf %3, %158 : vector<16x32xf32>
    %c0_96 = arith.constant 0 : index
    %c0_97 = arith.constant 0 : index
    %c0_98 = arith.constant 0 : index
    %160 = vector.load %arg10[%c0_96, %c0_97, %c0_98] : memref<1x1x32xf32, #tpu.memory_space<vmem>>, vector<1x1x32xf32>
    %161 = vector.shape_cast %160 : vector<1x1x32xf32> to vector<1x32xf32>
    %162 = vector.broadcast %161 : vector<1x32xf32> to vector<16x32xf32>
    %163 = arith.addf %159, %162 : vector<16x32xf32>
    %c0_99 = arith.constant 0 : index
    %c0_100 = arith.constant 0 : index
    %c0_101 = arith.constant 0 : index
    %164 = vector.load %arg13[%c0_99, %c0_100, %c0_101] : memref<1x1x32xf32, #tpu.memory_space<vmem>>, vector<1x1x32xf32>
    %165 = vector.shape_cast %164 : vector<1x1x32xf32> to vector<1x32xf32>
    %c0_102 = arith.constant 0 : index
    %c0_103 = arith.constant 0 : index
    %c0_104 = arith.constant 0 : index
    %166 = vector.load %arg14[%c0_102, %c0_103, %c0_104] : memref<1x1x32xf32, #tpu.memory_space<vmem>>, vector<1x1x32xf32>
    %167 = vector.shape_cast %166 : vector<1x1x32xf32> to vector<1x32xf32>
    %cst_105 = arith.constant dense<0.000000e+00> : vector<16xf32>
    %168 = vector.multi_reduction <add>, %163, %cst_105 [1] : vector<16x32xf32> to vector<16xf32>
    %169 = vector.shape_cast %168 : vector<16xf32> to vector<16x1xf32>
    %cst_106 = arith.constant 3.200000e+01 : f32
    %170 = vector.broadcast %cst_106 : f32 to vector<16x1xf32>
    %171 = arith.divf %169, %170 : vector<16x1xf32>
    %172 = vector.broadcast %171 : vector<16x1xf32> to vector<16x32xf32>
    %173 = arith.subf %163, %172 : vector<16x32xf32>
    %174 = arith.mulf %173, %173 : vector<16x32xf32>
    %cst_107 = arith.constant dense<0.000000e+00> : vector<16xf32>
    %175 = vector.multi_reduction <add>, %174, %cst_107 [1] : vector<16x32xf32> to vector<16xf32>
    %176 = vector.shape_cast %175 : vector<16xf32> to vector<16x1xf32>
    %cst_108 = arith.constant 3.200000e+01 : f32
    %177 = vector.broadcast %cst_108 : f32 to vector<16x1xf32>
    %178 = arith.divf %176, %177 : vector<16x1xf32>
    %179 = vector.broadcast %171 : vector<16x1xf32> to vector<16x32xf32>
    %180 = arith.subf %163, %179 : vector<16x32xf32>
    %cst_109 = arith.constant 9.99999974E-6 : f32
    %181 = vector.broadcast %cst_109 : f32 to vector<16x1xf32>
    %182 = arith.addf %178, %181 : vector<16x1xf32>
    %183 = math.rsqrt %182 : vector<16x1xf32>
    %184 = vector.broadcast %183 : vector<16x1xf32> to vector<16x32xf32>
    %185 = arith.mulf %180, %184 : vector<16x32xf32>
    %186 = vector.broadcast %165 : vector<1x32xf32> to vector<16x32xf32>
    %187 = arith.mulf %185, %186 : vector<16x32xf32>
    %188 = vector.broadcast %167 : vector<1x32xf32> to vector<16x32xf32>
    %189 = arith.addf %187, %188 : vector<16x32xf32>
    %c0_110 = arith.constant 0 : index
    %c0_111 = arith.constant 0 : index
    %c0_112 = arith.constant 0 : index
    %190 = vector.load %arg15[%c0_110, %c0_111, %c0_112] : memref<1x32x128xf32, #tpu.memory_space<vmem>>, vector<1x32x128xf32>
    %191 = vector.shape_cast %190 : vector<1x32x128xf32> to vector<32x128xf32>
    %cst_113 = arith.constant dense<0.000000e+00> : vector<16x128xf32>
    %192 = tpu.matmul %189, %191, %cst_113 {dimension_numbers = #tpu.dot_dimension_numbers<[1], [0], [0], [1], [0, 0, 1, 1], [], []>} : vector<16x32xf32>, vector<32x128xf32>, vector<16x128xf32> -> vector<16x128xf32>
    %c0_114 = arith.constant 0 : index
    %c0_115 = arith.constant 0 : index
    %c0_116 = arith.constant 0 : index
    %193 = vector.load %arg16[%c0_114, %c0_115, %c0_116] : memref<1x1x128xf32, #tpu.memory_space<vmem>>, vector<1x1x128xf32>
    %194 = vector.shape_cast %193 : vector<1x1x128xf32> to vector<1x128xf32>
    %195 = vector.broadcast %194 : vector<1x128xf32> to vector<16x128xf32>
    %196 = arith.addf %192, %195 : vector<16x128xf32>
    %cst_117 = arith.constant 5.000000e-01 : f32
    %197 = vector.broadcast %cst_117 : f32 to vector<16x128xf32>
    %198 = arith.mulf %197, %196 : vector<16x128xf32>
    %199 = arith.mulf %196, %196 : vector<16x128xf32>
    %200 = arith.mulf %196, %199 : vector<16x128xf32>
    %cst_118 = arith.constant 4.471500e-02 : f32
    %201 = vector.broadcast %cst_118 : f32 to vector<16x128xf32>
    %202 = arith.mulf %201, %200 : vector<16x128xf32>
    %203 = arith.addf %196, %202 : vector<16x128xf32>
    %cst_119 = arith.constant 0.797884583 : f32
    %204 = vector.broadcast %cst_119 : f32 to vector<16x128xf32>
    %205 = arith.mulf %204, %203 : vector<16x128xf32>
    %206 = math.tanh %205 : vector<16x128xf32>
    %cst_120 = arith.constant 1.000000e+00 : f32
    %207 = vector.broadcast %cst_120 : f32 to vector<16x128xf32>
    %208 = arith.addf %207, %206 : vector<16x128xf32>
    %209 = arith.mulf %198, %208 : vector<16x128xf32>
    %c0_121 = arith.constant 0 : index
    %c0_122 = arith.constant 0 : index
    %c0_123 = arith.constant 0 : index
    %210 = vector.load %arg17[%c0_121, %c0_122, %c0_123] : memref<1x128x32xf32, #tpu.memory_space<vmem>>, vector<1x128x32xf32>
    %211 = vector.shape_cast %210 : vector<1x128x32xf32> to vector<128x32xf32>
    %cst_124 = arith.constant dense<0.000000e+00> : vector<16x32xf32>
    %212 = tpu.matmul %209, %211, %cst_124 {dimension_numbers = #tpu.dot_dimension_numbers<[1], [0], [0], [1], [0, 0, 1, 1], [], []>} : vector<16x128xf32>, vector<128x32xf32>, vector<16x32xf32> -> vector<16x32xf32>
    %c0_125 = arith.constant 0 : index
    %c0_126 = arith.constant 0 : index
    %c0_127 = arith.constant 0 : index
    %213 = vector.load %arg18[%c0_125, %c0_126, %c0_127] : memref<1x1x32xf32, #tpu.memory_space<vmem>>, vector<1x1x32xf32>
    %214 = vector.shape_cast %213 : vector<1x1x32xf32> to vector<1x32xf32>
    %215 = vector.broadcast %214 : vector<1x32xf32> to vector<16x32xf32>
    %216 = arith.addf %212, %215 : vector<16x32xf32>
    %217 = arith.addf %163, %216 : vector<16x32xf32>
    %c0_128 = arith.constant 0 : index
    %c0_129 = arith.constant 0 : index
    %218 = vector.load %arg19[%c0_128, %c0_129] : memref<32x128xf32, #tpu.memory_space<vmem>>, vector<32x128xf32>
    %cst_130 = arith.constant dense<0.000000e+00> : vector<16x128xf32>
    %219 = tpu.matmul %217, %218, %cst_130 {dimension_numbers = #tpu.dot_dimension_numbers<[1], [0], [0], [1], [0, 0, 1, 1], [], []>} : vector<16x32xf32>, vector<32x128xf32>, vector<16x128xf32> -> vector<16x128xf32>
    %c0_131 = arith.constant 0 : index
    %c0_132 = arith.constant 0 : index
    %220 = vector.load %arg20[%c0_131, %c0_132] : memref<1x128xf32, #tpu.memory_space<vmem>>, vector<1x128xf32>
    %221 = vector.broadcast %220 : vector<1x128xf32> to vector<16x128xf32>
    %222 = arith.addf %219, %221 : vector<16x128xf32>
    %c0_133 = arith.constant 0 : index
    %c0_134 = arith.constant 0 : index
    %223 = vector.load %arg21[%c0_133, %c0_134] : memref<16x128xf32, #tpu.memory_space<vmem>>, vector<16x128xf32>
    tpu.vector_store %arg21[%c0_133, %c0_134], %222 {strides = array<i32>} : memref<16x128xf32, #tpu.memory_space<vmem>>, vector<16x128xf32>,
    return
  }
}

</mosaic_0001>

<bundles_post_ra>
// kernel: tpu_custom_call.1
= control target key start
LH: loop header
LB: loop body
LE: loop exit
PB: predicated region body
PF: predicated region fallthrough
CT: control target
= control target key end

     0   :  { %s2809_s0 = inlined_call_operand.vmem [shape: f32[16,32], index: 0, kind: input, shape index: {}]   ;;  %s2810_s1 = inlined_call_operand.vmem [shape: f32[8,32], index: 1, kind: input, shape index: {}]   ;;  %s2811_s2 = inlined_call_operand.vmem [shape: s32[2,8], index: 2, kind: input, shape index: {}]   ;;  %s2812_s3 = inlined_call_operand.vmem [shape: f32[1,2,32,16], index: 3, kind: input, shape index: {}]   ;;  %s2813_s4 = inlined_call_operand.vmem [shape: f32[1,2,1,16], index: 4, kind: input, shape index: {}]   ;;  %s2814_s5 = inlined_call_operand.vmem [shape: f32[1,2,32,16], index: 5, kind: input, shape index: {}]   ;;  %s2815_s6 = inlined_call_operand.vmem [shape: f32[1,2,1,16], index: 6, kind: input, shape index: {}]   ;;  %s2816_s7 = inlined_call_operand.vmem [shape: f32[1,2,32,16], index: 7, kind: input, shape index: {}]   ;;  %s2817_s8 = inlined_call_operand.vmem [shape: f32[1,2,1,16], index: 8, kind: input, shape index: {}]   ;;  %s2818_s9 = inlined_call_operand.vmem [shape: f32[1,2,16,32], index: 9, kind: input, shape index: {}]   ;;  %s2819_s10 = inlined_call_operand.vmem [shape: f32[1,1,32], index: 10, kind: input, shape index: {}]   ;;  %s2820_s11 = inlined_call_operand.vmem [shape: f32[1,1,32], index: 11, kind: input, shape index: {}]   ;;  %s2821_s12 = inlined_call_operand.vmem [shape: f32[1,1,32], index: 12, kind: input, shape index: {}]   ;;  %s2822_s13 = inlined_call_operand.vmem [shape: f32[1,1,32], index: 13, kind: input, shape index: {}]   ;;  %s2823_s14 = inlined_call_operand.vmem [shape: f32[1,1,32], index: 14, kind: input, shape index: {}]   ;;  %s2824_s15 = inlined_call_operand.vmem [shape: f32[1,32,128], index: 15, kind: input, shape index: {}]   ;;  %s2825_s16 = inlined_call_operand.vmem [shape: f32[1,1,128], index: 16, kind: input, shape index: {}]   ;;  %s2826_s17 = inlined_call_operand.vmem [shape: f32[1,128,32], index: 17, kind: input, shape index: {}]   ;;  %s2827_s18 = inlined_call_operand.vmem [shape: f32[1,1,32], index: 18, kind: input, shape index: {}]   ;;  %s2828_s19 = inlined_call_operand.vmem [shape: f32[32,128], index: 19, kind: input, shape index: {}]   ;;  %s2829_s20 = inlined_call_operand.vmem [shape: f32[1,128], index: 20, kind: input, shape index: {}]   ;;  %s2830_s21 = inlined_call_operand.hbm [shape: f32[16,128], index: 21, kind: output, shape index: {}]  }
   0x1   :  { %2835 = sst [smem:[#allocation5_spill]] %s2809_s0 }
   0x2   :  { %2836 = sst [smem:[#allocation6_spill]] %s2810_s1 }
   0x3   :  { %2837 = sst [smem:[#allocation7_spill]] %s2811_s2 }
   0x4   :  { %2838 = sst [smem:[#allocation8_spill]] %s2812_s3 }
   0x5   :  { %2839 = sst [smem:[#allocation9_spill]] %s2813_s4 }
   0x6   :  { %2840 = sst [smem:[#allocation10_spill]] %s2814_s5 }
   0x7   :  { %2841 = sst [smem:[#allocation11_spill]] %s2825_s16 }
   0x8   :  { %s2842_s26 = sld [smem:[#allocation5_spill]]  ;;  %s2843_s16 = sld [smem:[#allocation6_spill]]  ;;  %vm79_vm0 = vcmask 261120  }
   0xe   :  { %v69_v0 = vld [vmem:[%s2842_s26] sm:$0xff]  ;;  %v70_v2 = vld [vmem:[%s2842_s26 + $0x8] sm:$0xff] }
   0xf   :  { %v71_v1 = vld [vmem:[%s2843_s16] sm:$0xff] }
  0x10   :  { %v2462_v3 = vadd.f32 %v71_v1, %v69_v0  ;;  %v2464_v4 = vadd.f32 %v71_v1, %v70_v2 }
  0x11   :  { %26 = vsyncpa [#allocation3], 0  ;;  %s2844_s4 = sld [smem:[#allocation8_spill]]  ;;  %v301_v19 = vld [vmem:[%s2816_s7] sm:$0xff]  ;;  %v302_v21 = vld [vmem:[%s2816_s7 + $0x8] sm:$0xff]  ;;  %s2845_s5 = sld [smem:[#allocation10_spill]] }
  0x12   :  { %v80_v5 = vsel %vm79_vm0, %v2462_v3, 0.0  ;;  %v83_v6 = vsel %vm79_vm0, %v2464_v4, 0.0  ;;  %v2189_v22 = vpack.c.bf16 %v302_v21, %v301_v19  ;;  %v303_v25 = vld [vmem:[%s2816_s7 + $0x10] sm:$0xff]  ;;  %v304_v27 = vld [vmem:[%s2816_s7 + $0x18] sm:$0xff]  ;;  %v1843_v42 = vld [vmem:[%s2820_s11] ss:$0 sm:$0xff] }
  0x13   :  { %81 = vadd.xlane.f32.xlu0 %v80_v5  ;;  %v2193_v28 = vpack.c.bf16 %v304_v27, %v303_v25  ;;  %v1844_v44 = vld [vmem:[%s2821_s12] ss:$0 sm:$0xff]  ;;  %v1877_v58 = vld [vmem:[%s2816_s7 + $0x28] sm:$0xff]  ;;  %v1878_v60 = vld [vmem:[%s2816_s7 + $0x30] sm:$0xff]  ;;  %v2337_v63 = vmov 0.0   ;;  %vm2338_vm1 = vmmov 0  }
  0x14   :  { %2190 = vmatprep.subr.bf16.mxu0 %v2189_v22  ;;  %v1876_v57 = vld [vmem:[%s2816_s7 + $0x20] sm:$0xff]  ;;  %v1879_v61 = vld [vmem:[%s2816_s7 + $0x38] sm:$0xff]  ;;  %s2846_s29 = sld [smem:[#allocation9_spill]]  ;;  %vm391_vm2 = vcmask 130048   ;;  %s2847_s24 = sld [smem:[#allocation7_spill]]  ;;  %vm468_vm4 = vcmask 64512  }
  0x15   :  { %2192 = vmatpush3.bf16.msra.mxu0 %v2189_v22  ;;  %v2213_v59 = vpack.c.bf16 %v1877_v58, %v1876_v57  ;;  %v2217_v62 = vpack.c.bf16 %v1879_v61, %v1878_v60  ;;  %v1851_v1 = vld [vmem:[%s2817_s8] ss:$0 sm:$0xff]  ;;  %v2588_v19 = vld [vmem:[%s2817_s8 + $0x1] ss:$0 sm:$0xff]  ;;  %v2339_v27 = vmov -1e+09  }
  0x16   :  { %2194 = vmatprep.subr.bf16.mxu0 %v2193_v28  ;;  %s2340_s26 = smov [#allocation2]  }
  0x17   :  { %84 = vadd.xlane.f32.xlu0 %v83_v6  ;;  %v123_v17 = vld [vmem:[%s2844_s4] sm:$0xff]  ;;  %v124_v18 = vld [vmem:[%s2844_s4 + $0x8] sm:$0xff]  ;;  %v125_v23 = vld [vmem:[%s2844_s4 + $0x10] sm:$0xff]  ;;  %s1832_s27 = sshll.u32 %s2340_s26, 4  ;;  %s1833_s27 = int_to_ptr.vmem [resolvable:$true] %s1832_s27 }
  0x18   :  { %v2173_v20 = vpack.c.bf16 %v124_v18, %v123_v17  ;;  %v126_v24 = vld [vmem:[%s2844_s4 + $0x18] sm:$0xff]  ;;  %v215_v29 = vld [vmem:[%s2845_s5] sm:$0xff]  ;;  %v216_v30 = vld [vmem:[%s2845_s5 + $0x8] sm:$0xff]  ;;  %p2318_p1 = scmp.lt.s32.totalorder %s1833_s27, %s1833_s27 }
  0x19   :  { %v2177_v26 = vpack.c.bf16 %v126_v24, %v125_v23  ;;  %v1860_v31 = vld [vmem:[%s2844_s4 + $0x20] sm:$0xff]  ;;  %2196 = vmatpush3.bf16.msra.mxu0 %v2193_v28  ;;  %v2181_v32 = vpack.c.bf16 %v216_v30, %v215_v29  ;;  %v1861_v33 = vld [vmem:[%s2844_s4 + $0x28] sm:$0xff]  ;;  %v217_v49 = vld [vmem:[%s2845_s5 + $0x10] sm:$0xff]  ;;  %v387_v23 = vlaneseq }
  0x1a   :  { %2174 = vmatprep.subr.bf16.mxu1 %v2173_v20  ;;  %v2197_v34 = vpack.c.bf16 %v1861_v33, %v1860_v31  ;;  %v218_v51 = vld [vmem:[%s2845_s5 + $0x18] sm:$0xff]  ;;  %v1862_v52 = vld [vmem:[%s2844_s4 + $0x30] sm:$0xff]  ;;  %v1845_v0 = vld [vmem:[%s2846_s29] ss:$0 sm:$0xff] }
  0x1b   :  { %2176 = vmatpush3.bf16.msra.mxu1 %v2173_v20  ;;  %v1863_v53 = vld [vmem:[%s2844_s4 + $0x38] sm:$0xff]  ;;  %v2185_v55 = vpack.c.bf16 %v218_v51, %v217_v49  ;;  %v74_v24 = vld [vmem:[%s2847_s24] sm:$0x3]  ;;  %v388_v25 = vshrl.u32 %v387_v23, 7  ;;  %v1869_v58 = vld [vmem:[%s2845_s5 + $0x28] sm:$0xff] }
  0x1c   :  { %2178 = vmatprep.subr.bf16.mxu1 %v2177_v26  ;;  %2198 = vmatprep.subr.bf16.mxu0 %v2197_v34  ;;  %v2201_v56 = vpack.c.bf16 %v1863_v53, %v1862_v52  ;;  %vm75_vm3 = vcmp.gt.s32.totalorder %v74_v24, 0  ;;  %v1868_v57 = vld [vmem:[%s2845_s5 + $0x20] sm:$0xff]  ;;  %v1870_v61 = vld [vmem:[%s2845_s5 + $0x30] sm:$0xff] }
  0x1d   :  { %v76_v28 = vsel %vm75_vm3, 0.0, %v2339_v27 }
  0x1f   :  { %2180 = vmatpush3.bf16.msra.mxu1 %v2177_v26  ;;  %v389_v26 = vsub.s32 0, %v388_v25 }
  0x20   :  { %2182 = vmatprep.subr.bf16.mxu1 %v2181_v32 }
  0x21   :  { %v2602_v29 = vrot.slane %v76_v28, %v389_v26 }
  0xa0   :  { %v82_v7 = vpop.xlane.xlu0 %81 }
  0xa1   :  { %v87_v8 = vmul.f32 0.03125, %v82_v7 }
  0xa3   :  { %v89_v9 = vsub.f32 %v2462_v3, %v87_v8 }
  0xa4   :  { %v85_v10 = vpop.xlane.xlu0 %84 }
  0xa5   :  { %v88_v11 = vmul.f32 0.03125, %v85_v10  ;;  %v91_v12 = vmul.f32 %v89_v9, %v89_v9  ;;  %v1848_v10 = vld [vmem:[%s2815_s6] ss:$0 sm:$0xff] }
  0xa7   :  { %v90_v13 = vsub.f32 %v2464_v4, %v88_v11  ;;  %v93_v14 = vsel %vm79_vm0, %v91_v12, 0.0 }
  0xa8   :  { %94 = vadd.xlane.f32.xlu1 %v93_v14 }
  0xa9   :  { %v92_v15 = vmul.f32 %v90_v13, %v90_v13 }
  0xab   :  { %v96_v16 = vsel %vm79_vm0, %v92_v15, 0.0 }
  0xac   :  { %97 = vadd.xlane.f32.xlu1 %v96_v16 }
 0x135   :  { %v95_v35 = vpop.xlane.xlu1 %94 }
 0x136   :  { %v99_v36 = vmul.f32 0.03125, %v95_v35 }
 0x138   :  { %v101_v37 = vadd.f32 1e-05, %v99_v36 }
 0x139   :  { %v98_v38 = vpop.xlane.xlu1 %97 }
 0x13a   :  { %2285 = vrsqrt.f32 %v101_v37  ;;  %v100_v39 = vmul.f32 0.03125, %v98_v38 }
 0x13c   :  { %v102_v40 = vadd.f32 1e-05, %v100_v39 }
 0x13e   :  { %2287 = vrsqrt.f32 %v102_v40 }
 0x144   :  { %v2286_v41 = vpop.eup %2285 }
 0x145   :  { %v105_v43 = vmul.f32 %v2286_v41, %v89_v9 }
 0x147   :  { %v113_v45 = vmul.f32 %v1843_v42, %v105_v43 }
 0x148   :  { %v2288_v46 = vpop.eup %2287 }
 0x149   :  { %v2516_v47 = vadd.f32 %v1844_v44, %v113_v45  ;;  %v106_v48 = vmul.f32 %v2288_v46, %v90_v13 }
 0x14b   :  { %v114_v50 = vmul.f32 %v1843_v42, %v106_v48  ;;  %2004 = vmatprep.mubr.msk.f32.mxu1 %vm79_vm0, %v2516_v47  ;;  %2026 = vmatprep.mubr.msk.f32.mxu0 %vm79_vm0, %v2516_v47  ;;  %v555_v42 = vsub.s32 1, %v388_v25 }
 0x14d   :  { %v2534_v54 = vadd.f32 %v1844_v44, %v114_v50  ;;  %v556_v45 = vrot.slane %v76_v28, %v555_v42 }
 0x14f   :  { %2005 = vmatmul.mubr.msk.f32.vlgmr.msra.gmra.mrb[0].mxu1 %vm79_vm0, %v2534_v54  ;;  %2027 = vmatmul.mubr.msk.f32.vlgmr.msra.gmra.mrb[0].mxu0 %vm79_vm0, %v2534_v54 }
 0x150   :  { %2184 = vmatpush3.bf16.msra.mxu1 %v2181_v32  ;;  %2200 = vmatpush3.bf16.msra.mxu0 %v2197_v34 }
 0x151   :  { %2015 = vmatprep.mubr.msk.f32.mxu1 %vm79_vm0, %v2516_v47  ;;  %2057 = vmatprep.mubr.msk.f32.mxu0 %vm79_vm0, %v2516_v47 }
 0x152   :  { %2186 = vmatprep.subr.bf16.mxu1 %v2185_v55  ;;  %2202 = vmatprep.subr.bf16.mxu0 %v2201_v56 }
 0x154   :  { %2188 = vmatpush3.bf16.msra.mxu1 %v2185_v55  ;;  %2204 = vmatpush3.bf16.msra.mxu0 %v2201_v56 }
 0x155   :  { %2214 = vmatprep.subr.bf16.mxu0 %v2213_v59  ;;  %2029 = vmatprep.subr.mxu1 %v2337_v63 }
 0x157   :  { %2016 = vmatmul.mubr.msk.f32.vlgmr.msra.gmra.mrb[2].mxu1 %vm79_vm0, %v2534_v54  ;;  %2058 = vmatmul.mubr.msk.f32.vlgmr.msra.gmra.mrb[2].mxu0 %vm79_vm0, %v2534_v54 }
 0x158   :  { %2216 = vmatpush3.bf16.msra.mxu0 %v2213_v59  ;;  %2079 = vmatprep.mubr.msk.f32.mxu0 %vm79_vm0, %v2516_v47  ;;  %v2205_v59 = vpack.c.bf16 %v1869_v58, %v1868_v57 }
 0x159   :  { %2218 = vmatprep.subr.bf16.mxu0 %v2217_v62  ;;  %2031 = vmatprep.mubr.msk.f32.mxu1 %vm2338_vm1, %v2337_v63 }
 0x15c   :  { %2220 = vmatpush3.bf16.msra.mxu0 %v2217_v62  ;;  %v1871_v62 = vld [vmem:[%s2845_s5 + $0x38] sm:$0xff] }
 0x15d   :  { %2092 = vmatprep.subr.mxu0 %v2337_v63 }
 0x15f   :  { %2080 = vmatmul.mubr.msk.f32.vlgmr.msra.gmra.mrb[4].mxu0 %vm79_vm0, %v2534_v54 }
 0x160   :  { %2094 = vmatprep.mubr.msk.f32.mxu0 %vm2338_vm1, %v2337_v63 }
 0x222   :  { %v2006_v2 = vpop.f32.mrb[0].mxu1  ;;  %v2028_v5 = vpop.f32.mrb[0].mxu0 }
 0x223   :  { %v212_v6 = vadd.f32 %v2006_v2, %v1845_v0  ;;  %v384_v7 = vadd.f32 %v2028_v5, %v1851_v1  ;;  %v206_v8 = vpop.f32.mrb[1].mxu1  ;;  %v378_v9 = vpop.f32.mrb[1].mxu0  ;;  %v2209_v2 = vpack.c.bf16 %v1871_v62, %v1870_v61 }
 0x224   :  { %v207_v17 = vadd.f32 %v1845_v0, %v206_v8  ;;  %v379_v18 = vadd.f32 %v1851_v1, %v378_v9 }
 0x22a   :  { %v2017_v11 = vpop.f32.mrb[2].mxu1  ;;  %v2579_v12 = vpop.f32.mrb[2].mxu0 }
 0x22b   :  { %v298_v13 = vadd.f32 %v2017_v11, %v1848_v10  ;;  %v292_v14 = vpop.f32.mrb[3].mxu1  ;;  %v2581_v15 = vpop.f32.mrb[3].mxu0 }
 0x22c   :  { %v293_v16 = vadd.f32 %v1848_v10, %v292_v14 }
 0x22e   :  { %2030 = vmatpush3.xpose.msk.msra.mxu1 %vm391_vm2, %v293_v16 }
 0x22f   :  { %2034 = vmatprep.subr.mxu1 %v2337_v63 }
 0x231   :  { %2032 = vmatmul.mubr.msk.f32.vlgmr.msra.gmra.mrb[4].mxu1 %vm391_vm2, %v207_v17 }
 0x232   :  { %2035 = vmatpush3.msra.mxu1 %v379_v18  ;;  %v2081_v20 = vpop.f32.mrb[4].mxu0  ;;  %2036 = vmatprep.mubr.msk.f32.mxu1 %vm2338_vm1, %v2337_v63 }
 0x233   :  { %v2594_v21 = vadd.f32 %v2081_v20, %v2588_v19  ;;  %v2596_v22 = vpop.f32.mrb[5].mxu0  ;;  %2039 = vmatprep.subr.mxu1 %v2337_v63 }
 0x234   :  { %v975_v14 = vadd.f32 %v2588_v19, %v2596_v22 }
 0x304   :  { %v464_v30 = vpop.f32.mrb[4].mxu1 }
 0x305   :  { %v465_v31 = vadd.f32 %v464_v30, %v2602_v29  ;;  %v2033_v32 = vpop.f32.mrb[5].mxu1 }
 0x307   :  { %v469_v33 = vsel %vm468_vm4, %v465_v31, -inf }
 0x308   :  { %470 = vmax.xlane.f32.xlu0 %v469_v33 }
 0x395   :  { %v471_v34 = vpop.xlane.xlu0 %470 }
 0x396   :  { %v472_v35 = vsub.f32 %v465_v31, %v471_v34 }
 0x398   :  { %v473_v36 = vmul.f32 1.442695, %v472_v35 }
 0x39a   :  { %2289 = vpow2.f32 %v473_v36 }
 0x3a4   :  { %v2290_v37 = vpop.eup %2289 }
 0x3a5   :  { %v475_v38 = vsel %vm468_vm4, %v2290_v37, 0.0 }
 0x3a6   :  { %476 = vadd.xlane.f32.xlu1 %v475_v38 }
 0x433   :  { %v477_v39 = vpop.xlane.xlu1 %476 }
 0x434   :  { %2291 = vrcp.f32 %v477_v39  ;;  %v1890_v39 = vld [vmem:[%s2818_s9 + $0x10] sm:$0xff] }
 0x43e   :  { %v2292_v40 = vpop.eup %2291 }
 0x43f   :  { %v479_v41 = vmul.f32 %v2292_v40, %v2290_v37  ;;  %v1891_v40 = vld [vmem:[%s2818_s9 + $0x18] sm:$0xff] }
 0x441   :  { %2037 = vmatmul.mubr.msk.f32.vlgmr.msra.gmra.mrb[6].mxu1 %vm468_vm4, %v479_v41  ;;  %v2221_v41 = vpack.c.bf16 %v1891_v40, %v1890_v39  ;;  %v1642_v39 = vld [vmem:[%s2826_s17 + $0x48] sm:$0xff] }
 0x442   :  { %2040 = vmatpush3.xpose.msk.msra.mxu1 %vm391_vm2, %v298_v13  ;;  %2041 = vmatprep.mubr.msk.f32.mxu1 %vm2338_vm1, %v2337_v63 }
 0x443   :  { %2044 = vmatprep.subr.mxu1 %v2337_v63 }
 0x445   :  { %2042 = vmatmul.mubr.msk.f32.vlgmr.msra.gmra.mrb[8].mxu1 %vm391_vm2, %v212_v6 }
 0x446   :  { %2045 = vmatpush3.msra.mxu1 %v384_v7  ;;  %2046 = vmatprep.mubr.msk.f32.mxu1 %vm2338_vm1, %v2337_v63  ;;  %v1873_v7 = vld [vmem:[%s2815_s6 + $0x1] ss:$0 sm:$0xff] }
 0x447   :  { %2206 = vmatprep.subr.bf16.mxu1 %v2205_v59 }
 0x514   :  { %v2615_v43 = vpop.f32.mrb[6].mxu1 }
 0x515   :  { %v2038_v44 = vpop.f32.mrb[7].mxu1 }
 0x518   :  { %v629_v46 = vpop.f32.mrb[8].mxu1 }
 0x519   :  { %v630_v48 = vadd.f32 %v629_v46, %v556_v45  ;;  %v2043_v49 = vpop.f32.mrb[9].mxu1 }
 0x51b   :  { %v633_v50 = vsel %vm468_vm4, %v630_v48, -inf }
 0x51c   :  { %634 = vmax.xlane.f32.xlu0 %v633_v50  ;;  %v1896_v50 = vld [vmem:[%s2819_s10] ss:$0 sm:$0xff] }
 0x5a9   :  { %v635_v51 = vpop.xlane.xlu0 %634 }
 0x5aa   :  { %v636_v52 = vsub.f32 %v630_v48, %v635_v51 }
 0x5ac   :  { %v637_v53 = vmul.f32 1.442695, %v636_v52 }
 0x5ae   :  { %2293 = vpow2.f32 %v637_v53 }
 0x5b8   :  { %v2294_v55 = vpop.eup %2293 }
 0x5b9   :  { %v639_v56 = vsel %vm468_vm4, %v2294_v55, 0.0 }
 0x5ba   :  { %640 = vadd.xlane.f32.xlu1 %v639_v56 }
 0x647   :  { %v641_v60 = vpop.xlane.xlu1 %640 }
 0x648   :  { %2295 = vrcp.f32 %v641_v60 }
 0x652   :  { %v2296_v0 = vpop.eup %2295 }
 0x653   :  { %v643_v1 = vmul.f32 %v2296_v0, %v2294_v55 }
 0x655   :  { %2047 = vmatmul.mubr.msk.f32.vlgmr.msra.gmra.mrb[10].mxu1 %vm468_vm4, %v643_v1 }
 0x656   :  { %2208 = vmatpush3.bf16.msra.mxu1 %v2205_v59  ;;  %2068 = vmatprep.mubr.msk.f32.mxu1 %vm79_vm0, %v2516_v47  ;;  %v1865_v47 = vld [vmem:[%s2846_s29 + $0x1] ss:$0 sm:$0xff] }
 0x657   :  { %2210 = vmatprep.subr.bf16.mxu1 %v2209_v2  ;;  %v799_v13 = vadd.f32 %v1865_v47, %v2581_v15 }
 0x65a   :  { %2212 = vmatpush3.bf16.msra.mxu1 %v2209_v2 }
 0x65b   :  { %2082 = vmatprep.subr.mxu1 %v2337_v63 }
 0x65d   :  { %2069 = vmatmul.mubr.msk.f32.vlgmr.msra.gmra.mrb[12].mxu1 %vm79_vm0, %v2534_v54  ;;  %v804_v54 = vadd.f32 %v2579_v12, %v1865_v47  ;;  %v1526_v47 = vld [vmem:[%s2824_s15 + $0x18] sm:$0xff] }
 0x65e   :  { %2084 = vmatprep.mubr.msk.f32.mxu1 %vm2338_vm1, %v2337_v63 }
 0x728   :  { %v2639_v5 = vpop.f32.mrb[10].mxu1 }
 0x729   :  { %v2048_v6 = vpop.f32.mrb[11].mxu1 }
 0x72a   :  { %v1524_v6 = vld [vmem:[%s2824_s15 + $0x8] sm:$0xff] }
 0x730   :  { %v2070_v8 = vpop.f32.mrb[12].mxu1 }
 0x731   :  { %v892_v9 = vadd.f32 %v2070_v8, %v1873_v7  ;;  %v886_v10 = vpop.f32.mrb[13].mxu1  ;;  %v1525_v8 = vld [vmem:[%s2824_s15 + $0x10] sm:$0xff] }
 0x732   :  { %v887_v11 = vadd.f32 %v1873_v7, %v886_v10  ;;  %v1633_v10 = vld [vmem:[%s2826_s17] sm:$0xff] }
 0x733   :  { %2093 = vmatpush3.xpose.msk.msra.mxu0 %vm391_vm2, %v892_v9  ;;  %v2233_v9 = vpack.c.bf16 %v1526_v47, %v1525_v8 }
 0x734   :  { %2083 = vmatpush3.xpose.msk.msra.mxu1 %vm391_vm2, %v887_v11  ;;  %2222 = vmatprep.subr.bf16.mxu0 %v2221_v41  ;;  %v1634_v11 = vld [vmem:[%s2826_s17 + $0x8] sm:$0xff] }
 0x735   :  { %2087 = vmatprep.subr.mxu1 %v2337_v63 }
 0x736   :  { %2095 = vmatmul.mubr.msk.f32.vlgmr.msra.gmra.mrb[6].mxu0 %vm391_vm2, %v804_v54  ;;  %v2237_v54 = vpack.c.bf16 %v1634_v11, %v1633_v10 }
 0x737   :  { %2085 = vmatmul.mubr.msk.f32.vlgmr.msra.gmra.mrb[14].mxu1 %vm391_vm2, %v799_v13  ;;  %2224 = vmatpush3.bf16.msra.mxu0 %v2221_v41  ;;  %v1643_v41 = vld [vmem:[%s2826_s17 + $0x50] sm:$0xff] }
 0x738   :  { %2088 = vmatpush3.msra.mxu1 %v975_v14  ;;  %2089 = vmatprep.mubr.msk.f32.mxu1 %vm2338_vm1, %v2337_v63 }
 0x739   :  { %2097 = vmatprep.subr.mxu1 %v2337_v63 }
 0x809   :  { %v1215_v12 = vpop.f32.mrb[6].mxu0 }
 0x80a   :  { %v1216_v16 = vadd.f32 %v1215_v12, %v556_v45  ;;  %v1055_v17 = vpop.f32.mrb[14].mxu1  ;;  %v2096_v18 = vpop.f32.mrb[7].mxu0 }
 0x80b   :  { %v1056_v15 = vadd.f32 %v1055_v17, %v2602_v29  ;;  %v2086_v20 = vpop.f32.mrb[15].mxu1 }
 0x80c   :  { %v1219_v23 = vsel %vm468_vm4, %v1216_v16, -inf  ;;  %v1897_v20 = vld [vmem:[%s2822_s13] ss:$0 sm:$0xff] }
 0x80d   :  { %1220 = vmax.xlane.f32.xlu1 %v1219_v23  ;;  %v1059_v19 = vsel %vm468_vm4, %v1056_v15, -inf }
 0x80e   :  { %1060 = vmax.xlane.f32.xlu0 %v1059_v19 }
 0x89a   :  { %v1221_v22 = vpop.xlane.xlu1 %1220 }
 0x89b   :  { %v1222_v24 = vsub.f32 %v1216_v16, %v1221_v22  ;;  %v1061_v25 = vpop.xlane.xlu0 %1060 }
 0x89c   :  { %v1062_v26 = vsub.f32 %v1056_v15, %v1061_v25 }
 0x89d   :  { %v1223_v27 = vmul.f32 1.442695, %v1222_v24  ;;  %v1898_v24 = vld [vmem:[%s2823_s14] ss:$0 sm:$0xff] }
 0x89e   :  { %v1063_v28 = vmul.f32 1.442695, %v1062_v26 }
 0x89f   :  { %2297 = vpow2.f32 %v1223_v27 }
 0x8a0   :  { %2299 = vpow2.f32 %v1063_v28 }
 0x8a9   :  { %v2298_v30 = vpop.eup %2297 }
 0x8aa   :  { %v2300_v31 = vpop.eup %2299  ;;  %v1225_v32 = vsel %vm468_vm4, %v2298_v30, 0.0 }
 0x8ab   :  { %1226 = vadd.xlane.f32.xlu1 %v1225_v32  ;;  %v1065_v29 = vsel %vm468_vm4, %v2300_v31, 0.0 }
 0x8ac   :  { %1066 = vadd.xlane.f32.xlu0 %v1065_v29  ;;  %v1637_v29 = vld [vmem:[%s2826_s17 + $0x20] sm:$0xff] }
 0x938   :  { %v1227_v33 = vpop.xlane.xlu1 %1226 }
 0x939   :  { %v1067_v34 = vpop.xlane.xlu0 %1066 }
 0x93a   :  { %2301 = vrcp.f32 %v1067_v34 }
 0x93b   :  { %2303 = vrcp.f32 %v1227_v33  ;;  %v1638_v33 = vld [vmem:[%s2826_s17 + $0x28] sm:$0xff] }
 0x93c   :  { %v2245_v34 = vpack.c.bf16 %v1638_v33, %v1637_v29 }
 0x944   :  { %v2302_v35 = vpop.eup %2301 }
 0x945   :  { %v1069_v36 = vmul.f32 %v2302_v35, %v2300_v31  ;;  %v2304_v37 = vpop.eup %2303  ;;  %v1636_v31 = vld [vmem:[%s2826_s17 + $0x18] sm:$0xff]  ;;  %v1639_v35 = vld [vmem:[%s2826_s17 + $0x30] sm:$0xff] }
 0x946   :  { %v1229_v38 = vmul.f32 %v2304_v37, %v2298_v30  ;;  %v1635_v30 = vld [vmem:[%s2826_s17 + $0x10] sm:$0xff] }
 0x947   :  { %2090 = vmatmul.mubr.msk.f32.vlgmr.msra.gmra.mrb[16].mxu1 %vm468_vm4, %v1069_v36  ;;  %v2241_v32 = vpack.c.bf16 %v1636_v31, %v1635_v30  ;;  %v1640_v36 = vld [vmem:[%s2826_s17 + $0x38] sm:$0xff] }
 0x948   :  { %2098 = vmatpush3.msra.mxu1 %v2594_v21  ;;  %2099 = vmatprep.mubr.msk.f32.mxu1 %vm2338_vm1, %v2337_v63  ;;  %v717_v21 = vld [vmem:[%s2818_s9] sm:$0xff]  ;;  %v718_v63 = vld [vmem:[%s2818_s9 + $0x8] sm:$0xff]  ;;  %v2249_v37 = vpack.c.bf16 %v1640_v36, %v1639_v35 }
 0x949   :  { %v2225_v42 = vpack.c.bf16 %v718_v63, %v717_v21  ;;  %v1644_v21 = vld [vmem:[%s2826_s17 + $0x58] sm:$0xff] }
 0x94a   :  { %v2257_v63 = vpack.c.bf16 %v1644_v21, %v1643_v41 }
 0x94b   :  { %2100 = vmatmul.mubr.msk.f32.vlgmr.msra.gmra.mrb[18].mxu1 %vm468_vm4, %v1229_v38  ;;  %2226 = vmatprep.subr.bf16.mxu0 %v2225_v42  ;;  %v1641_v38 = vld [vmem:[%s2826_s17 + $0x40] sm:$0xff] }
 0x94c   :  { %v2253_v40 = vpack.c.bf16 %v1642_v39, %v1641_v38 }
 0xa1a   :  { %v1139_v44 = vpop.f32.mrb[16].mxu1 }
 0xa1b   :  { %v2091_v45 = vpop.f32.mrb[17].mxu1  ;;  %2106 = vmatprep.mubr.msk.f32.mxu0 %vm391_vm2, %v1139_v44  ;;  %v1646_v44 = vld [vmem:[%s2826_s17 + $0x68] sm:$0xff] }
 0xa1e   :  { %v1299_v46 = vpop.f32.mrb[18].mxu1 }
 0xa1f   :  { %v2101_v48 = vpop.f32.mrb[19].mxu1  ;;  %2107 = vmatmul.mubr.msk.f32.vlgmr.msra.gmra.mrb[8].mxu0 %vm391_vm2, %v1299_v46  ;;  %v1647_v46 = vld [vmem:[%s2826_s17 + $0x70] sm:$0xff] }
 0xa20   :  { %2228 = vmatpush3.bf16.msra.mxu0 %v2225_v42  ;;  %2113 = vmatprep.mubr.msk.f32.mxu0 %vm391_vm2, %v2615_v43  ;;  %v1645_v42 = vld [vmem:[%s2826_s17 + $0x60] sm:$0xff]  ;;  %v1648_v48 = vld [vmem:[%s2826_s17 + $0x78] sm:$0xff]  ;;  %s2848_s17 = sld [smem:[#allocation11_spill]] }
 0xa21   :  { %2238 = vmatprep.subr.bf16.mxu0 %v2237_v54  ;;  %v2261_v45 = vpack.c.bf16 %v1646_v44, %v1645_v42 }
 0xa27   :  { %2114 = vmatmul.mubr.msk.f32.vlgmr.msra.gmra.mrb[8].mxu0 %vm391_vm2, %v2639_v5  ;;  %v1523_v5 = vld [vmem:[%s2824_s15] sm:$0xff] }
 0xa28   :  { %v2229_v7 = vpack.c.bf16 %v1524_v6, %v1523_v5  ;;  %2240 = vmatpush3.bf16.msra.mxu0 %v2237_v54 }
 0xa29   :  { %2242 = vmatprep.subr.bf16.mxu0 %v2241_v32 }
 0xa2a   :  { %2230 = vmatprep.subr.bf16.mxu1 %v2229_v7 }
 0xa2b   :  { %2232 = vmatpush3.bf16.msra.mxu1 %v2229_v7 }
 0xa2c   :  { %2234 = vmatprep.subr.bf16.mxu1 %v2233_v9  ;;  %2244 = vmatpush3.bf16.msra.mxu0 %v2241_v32 }
 0xa2d   :  { %2246 = vmatprep.subr.bf16.mxu0 %v2245_v34 }
 0xa2f   :  { %2236 = vmatpush3.bf16.msra.mxu1 %v2233_v9 }
 0xa30   :  { %2248 = vmatpush3.bf16.msra.mxu0 %v2245_v34 }
 0xa31   :  { %2250 = vmatprep.subr.bf16.mxu0 %v2249_v37 }
 0xa34   :  { %2252 = vmatpush3.bf16.msra.mxu0 %v2249_v37 }
 0xa35   :  { %2254 = vmatprep.subr.bf16.mxu0 %v2253_v40 }
 0xa38   :  { %2256 = vmatpush3.bf16.msra.mxu0 %v2253_v40 }
 0xa39   :  { %2258 = vmatprep.subr.bf16.mxu0 %v2257_v63 }
 0xa3c   :  { %2260 = vmatpush3.bf16.msra.mxu0 %v2257_v63 }
 0xa3d   :  { %2262 = vmatprep.subr.bf16.mxu0 %v2261_v45 }
 0xa40   :  { %2264 = vmatpush3.bf16.msra.mxu0 %v2261_v45 }
 0xafa   :  { %v2115_v49 = vpop.f32.mrb[8].mxu0 }
 0xafb   :  { %v1469_v51 = vadd.f32 %v2115_v49, %v2464_v4  ;;  %v1459_v52 = vpop.f32.mrb[9].mxu0  ;;  %v2265_v49 = vpack.c.bf16 %v1648_v48, %v1647_v46 }
 0xafc   :  { %v1468_v53 = vadd.f32 %v1459_v52, %v2462_v3 }
 0xafd   :  { %v2692_v55 = vadd.f32 %v1896_v50, %v1469_v51  ;;  %2266 = vmatprep.subr.bf16.mxu0 %v2265_v49  ;;  %v1734_v51 = vld [vmem:[%s2828_s19 + $0x8] sm:$0xff] }
 0xafe   :  { %v2694_v56 = vadd.f32 %v1896_v50, %v1468_v53  ;;  %2268 = vmatpush3.bf16.msra.mxu0 %v2265_v49  ;;  %v1733_v50 = vld [vmem:[%s2828_s19] sm:$0xff] }
 0xaff   :  { %v1484_v43 = vsel %vm79_vm0, %v2692_v55, 0.0  ;;  %v2269_v52 = vpack.c.bf16 %v1734_v51, %v1733_v50  ;;  %v1899_v53 = vld [vmem:[%s2848_s17] ss:$0 sm:$0xff] }
 0xb00   :  { %1485 = vadd.xlane.f32.xlu1 %v1484_v43  ;;  %v1481_v57 = vsel %vm79_vm0, %v2694_v56, 0.0 }
 0xb01   :  { %1482 = vadd.xlane.f32.xlu0 %v1481_v57  ;;  %2270 = vmatprep.subr.bf16.mxu1 %v2269_v52 }
 0xb8d   :  { %v1486_v58 = vpop.xlane.xlu1 %1485 }
 0xb8e   :  { %v1488_v59 = vmul.f32 0.03125, %v1486_v58  ;;  %v1483_v60 = vpop.xlane.xlu0 %1482 }
 0xb8f   :  { %v1487_v61 = vmul.f32 0.03125, %v1483_v60 }
 0xb90   :  { %v1490_v4 = vsub.f32 %v2692_v55, %v1488_v59 }
 0xb91   :  { %v1489_v3 = vsub.f32 %v2694_v56, %v1487_v61 }
 0xb92   :  { %v1492_v62 = vmul.f32 %v1490_v4, %v1490_v4 }
 0xb93   :  { %v1491_v0 = vmul.f32 %v1489_v3, %v1489_v3 }
 0xb94   :  { %v1496_v1 = vsel %vm79_vm0, %v1492_v62, 0.0 }
 0xb95   :  { %1497 = vadd.xlane.f32.xlu1 %v1496_v1  ;;  %v1493_v2 = vsel %vm79_vm0, %v1491_v0, 0.0 }
 0xb96   :  { %1494 = vadd.xlane.f32.xlu0 %v1493_v2 }
 0xc22   :  { %v1498_v13 = vpop.xlane.xlu1 %1497 }
 0xc23   :  { %v1500_v14 = vmul.f32 0.03125, %v1498_v13  ;;  %v1495_v12 = vpop.xlane.xlu0 %1494 }
 0xc24   :  { %v1499_v16 = vmul.f32 0.03125, %v1495_v12  ;;  %v1736_v12 = vld [vmem:[%s2828_s19 + $0x18] sm:$0xff] }
 0xc25   :  { %v1502_v17 = vadd.f32 1e-05, %v1500_v14  ;;  %v1735_v14 = vld [vmem:[%s2828_s19 + $0x10] sm:$0xff] }
 0xc26   :  { %v1501_v18 = vadd.f32 1e-05, %v1499_v16  ;;  %v2273_v16 = vpack.c.bf16 %v1736_v12, %v1735_v14 }
 0xc27   :  { %2305 = vrsqrt.f32 %v1502_v17  ;;  %v1902_v17 = vld [vmem:[%s2827_s18] ss:$0 sm:$0xff]  ;;  %s2313_s18 = scalar_lea.vmem %s1833_s27, 256 }
 0xc28   :  { %2307 = vrsqrt.f32 %v1501_v18  ;;  %p2314_p0 = scmp.ne.s32.totalorder %s1833_s27, %s2313_s18  ;;  %p2319_p2 = scmp.lt.s32.totalorder %s2313_s18, %s2313_s18 }
 0xc2a   :  { %p2320_p3 = por %p2319_p2, %p2318_p1 }
 0xc2c   :  { %p2321_p4 = pnand %p2320_p3, %p2314_p0 }
 0xc31   :  { %v2306_v15 = vpop.eup %2305 }
 0xc32   :  { %v2308_v23 = vpop.eup %2307  ;;  %v1506_v19 = vmul.f32 %v2306_v15, %v1490_v4 }
 0xc33   :  { %v1505_v22 = vmul.f32 %v2308_v23, %v1489_v3 }
 0xc34   :  { %v1514_v25 = vmul.f32 %v1897_v20, %v1506_v19 }
 0xc35   :  { %v1513_v26 = vmul.f32 %v1897_v20, %v1505_v22 }
 0xc36   :  { %v1522_v28 = vadd.f32 %v1898_v24, %v1514_v25 }
 0xc37   :  { %v1521_v27 = vadd.f32 %v1898_v24, %v1513_v26  ;;  %v1903_v24 = vld [vmem:[%s2829_s20] ss:$0 sm:$0xff] }
 0xc39   :  { %2124 = vmatprep.mubr.msk.f32.mxu1 %vm79_vm0, %v1521_v27 }
 0xc3a   :  { %2125 = vmatmul.mubr.msk.f32.vlgmr.msra.gmra.mrb[20].mxu1 %vm79_vm0, %v1522_v28 }
 0xc3b   :  { %2272 = vmatpush3.bf16.msra.mxu1 %v2269_v52 }
 0xc3c   :  { %2274 = vmatprep.subr.bf16.mxu1 %v2273_v16 }
 0xc3f   :  { %2276 = vmatpush3.bf16.msra.mxu1 %v2273_v16 }
 0xd0d   :  { %v2126_v43 = vpop.f32.mrb[20].mxu1 }
 0xd0e   :  { %v1612_v57 = vadd.f32 %v2126_v43, %v1899_v53  ;;  %v1606_v58 = vpop.f32.mrb[21].mxu1 }
 0xd0f   :  { %v1607_v59 = vadd.f32 %v1899_v53, %v1606_v58 }
 0xd10   :  { %v1618_v60 = vmul.f32 %v1612_v57, %v1612_v57  ;;  %v1616_v11 = vmul.f32 0.5, %v1612_v57 }
 0xd11   :  { %v1617_v61 = vmul.f32 %v1607_v59, %v1607_v59  ;;  %v1615_v9 = vmul.f32 0.5, %v1607_v59 }
 0xd12   :  { %v1620_v4 = vmul.f32 %v1618_v60, %v1612_v57 }
 0xd13   :  { %v1619_v3 = vmul.f32 %v1617_v61, %v1607_v59 }
 0xd14   :  { %v1622_v62 = vmul.f32 0.044715, %v1620_v4 }
 0xd15   :  { %v1621_v0 = vmul.f32 0.044715, %v1619_v3 }
 0xd16   :  { %v1624_v1 = vadd.f32 %v1622_v62, %v1612_v57 }
 0xd17   :  { %v1623_v2 = vadd.f32 %v1621_v0, %v1607_v59 }
 0xd18   :  { %v1626_v5 = vmul.f32 0.7978846, %v1624_v1 }
 0xd19   :  { %v1625_v6 = vmul.f32 0.7978846, %v1623_v2 }
 0xd1a   :  { %2309 = vtanh.f32 %v1626_v5 }
 0xd1b   :  { %2311 = vtanh.f32 %v1625_v6 }
 0xd24   :  { %v2310_v7 = vpop.eup %2309 }
 0xd25   :  { %v2312_v8 = vpop.eup %2311  ;;  %v1630_v47 = vadd.f32 1.0, %v2310_v7 }
 0xd26   :  { %v1629_v10 = vadd.f32 1.0, %v2312_v8 }
 0xd27   :  { %v1632_v13 = vmul.f32 %v1630_v47, %v1616_v11 }
 0xd28   :  { %v1631_v54 = vmul.f32 %v1629_v10, %v1615_v9 }
 0xd2a   :  { %2159 = vmatprep.mubr.f32.mxu0 %v1631_v54 }
 0xd2b   :  { %2160 = vmatmul.mubr.f32.vlgmr.msra.gmra.mrb[10].mxu0 %v1632_v13 }
 0xdfe   :  { %v2161_v18 = vpop.f32.mrb[10].mxu0 }
 0xdff   :  { %v1728_v15 = vadd.f32 %v2161_v18, %v1902_v17  ;;  %v1722_v20 = vpop.f32.mrb[11].mxu0 }
 0xe00   :  { %v1723_v23 = vadd.f32 %v1902_v17, %v1722_v20 }
 0xe01   :  { %v1732_v22 = vadd.f32 %v1728_v15, %v2692_v55 }
 0xe02   :  { %v1731_v19 = vadd.f32 %v1723_v23, %v2694_v56 }
 0xe04   :  { %2170 = vmatprep.mubr.msk.f32.mxu1 %vm79_vm0, %v1731_v19 }
 0xe05   :  { %2171 = vmatmul.mubr.msk.f32.vlgmr.msra.gmra.mrb[22].mxu1 %vm79_vm0, %v1732_v22 }
 0xed8   :  { %v2172_v25 = vpop.f32.mrb[22].mxu1 }
 0xed9   :  { %v1822_v26 = vadd.f32 %v2172_v25, %v1903_v24  ;;  %v1816_v27 = vpop.f32.mrb[23].mxu1 }
 0xeda   :  { %v1817_v28 = vadd.f32 %v1903_v24, %v1816_v27 }
 0xedb   :  { %1826 = vst [vmem:[#allocation2 + $0x8] sm:$0xff] %v1822_v26 }
 0xedc   :  { %1825 = vst [vmem:[#allocation2] sm:$0xff] %v1817_v28 }
 0xedd   :  { %2324 = shalt.err (!%p2321_p4)
}
 0xede   :  { %s2325_s20 = scalar_lea.hbm %s2830_s21, 256 }
 0xedf   :  { %p2326_p5 = scmp.ne.s32.totalorder %s2830_s21, %s2325_s20  ;;  %p2329_p6 = scmp.lt.u32.totalorder %s2325_s20, %s2830_s21 }
 0xee1   :  { %p2331_p7 = pnand %p2329_p6, %p2326_p5 }
 0xee3   :  { %2334 = shalt.err (!%p2331_p7)
}
 0xee4   :  { %s2341_s11 = smov 128   ;;  %s2342_s6 = smov 8  }
 0xee5   :  { %1838 = dma.vmem_to_hbm [thread:$0]  %s1833_s27, 256, %s2830_s21, [#allocation3], %s2341_s11, %s2341_s11, %s2342_s6  }
 0xee6   :  { %2335 = dma.done.wait [#allocation3], 256  }
 0xee7   :  { %2336 = vsyncadd [#allocation3], 4294967040 }
 0xee8   :  { %1842 = vsyncpa [#allocation3], 1 }

</bundles_post_ra>
